<compile_context>
chip_gen: v6e
topology: v6e:2x2x1
jax: 0.10.0
libtpu: 0.0.40
codegen_flags: <defaults>
</compile_context>

<pallas_src>
import functools

import jax
import jax.numpy as jnp
from jax.experimental import pallas as pl
from jax.experimental.pallas import tpu as pltpu

# ---------------- problem configuration (matches module __init__) ----------------
KSIZE = 5            # kernel_size
PAD = KSIZE // 2     # default_conv uses padding = kernel_size // 2 ("same" conv)
UPSCALE = 2          # upsample_scale for PixelShuffle


def _fused_conv_shuffle_kernel(x_ref, w_ref, b_ref, o_ref, xp_ref, *, cin):
    """Fused same-pad conv(+bias)+PixelShuffle for one image.

    x_ref : (1, H, W*Cin)       unpadded, lane-flattened NHWC input (VMEM)
    w_ref : (KH*Kpad, W*Cout)   K-folded block-Toeplitz weights; contraction zero-padded to
                                Kpad lanes per tap; output columns pre-permuted so the store
                                order already matches PixelShuffle (VMEM, single-buffered)
    b_ref : (1, W*Cout)         bias tiled over W with the same column permutation
    o_ref : (1, H, W*Cout)      lane-dense output (W*Cout = 128 for the test shapes)
    xp_ref: (Hp, Kpad) f32      VMEM scratch holding the zero-padded input slab
    """
    H = o_ref.shape[1]
    WCin = x_ref.shape[2]
    Kpad = xp_ref.shape[1]
    KH = w_ref.shape[0] // Kpad

    # In-kernel zero padding: memset the slab, copy the interior at (PAD rows, PAD*Cin lanes).
    xp_ref[...] = jnp.zeros_like(xp_ref)
    xp_ref[PAD:PAD + H, PAD * cin:PAD * cin + WCin] = x_ref[0].astype(xp_ref.dtype)

    # KH row-shifted views packed side by side -> single deep-K matmul on the MXU.
    lhs = jnp.concatenate([xp_ref[kh:kh + H, :] for kh in range(KH)], axis=1)  # (H, KH*Kpad)
    acc = jnp.dot(lhs, w_ref[...], preferred_element_type=jnp.float32)
    acc = acc + b_ref[...].astype(jnp.float32)                                 # bias fold
    o_ref[0, ...] = acc.astype(o_ref.dtype)


def prepare_fused_params(weight_oihw, bias, W, r=UPSCALE):
    """One-time parameter fusion — HOISTED out of the per-call forward path.

    Returns:
      w_fused: (KH*Kpad, W*Cout) K-folded block-Toeplitz weights, contraction zero-padded to a
               multiple of 128 lanes, output columns permuted for fused PixelShuffle(r).
      b_fused: (1, W*Cout) bias tiled over W with the same column permutation.
    """
    Cout, Cin, KH, KW = weight_oihw.shape
    Wp = W + KW - 1
    C2 = Cout // (r * r)
    kdim = Wp * Cin
    kpad = ((kdim + 127) // 128) * 128   # lane-dense contraction (zero cols are free)

    # B[kh, wp*Cin + ci, w*Cout + co] = weight[co, ci, kh, wp - w] if 0 <= wp - w < KW else 0
    sel = (jnp.arange(Wp)[None, None, :] ==
           (jnp.arange(W)[None, :, None] + jnp.arange(KW)[:, None, None])
           ).astype(weight_oihw.dtype)                                   # (KW, W, Wp)
    B = jnp.einsum('oihk,kwp->hpiwo', weight_oihw, sel)                  # (KH, Wp, Cin, W, Cout)
    B = B.reshape(KH, kdim, W * Cout)

    # PixelShuffle(r) as a column permutation:
    #   target col m = (i, w, j, c2) row-major  <-  source col w*Cout + (c2*r*r + i*r + j)
    I, Wv, J, C = jnp.meshgrid(jnp.arange(r), jnp.arange(W), jnp.arange(r),
                               jnp.arange(C2), indexing='ij')
    src = (Wv * Cout + C * (r * r) + I * r + J).reshape(-1)              # (W*Cout,)
    B = B[:, :, src]

    # Zero-pad the contraction to kpad lanes and fold KH into K.
    B = jnp.pad(B, ((0, 0), (0, kpad - kdim), (0, 0)))
    w_fused = B.reshape(KH * kpad, W * Cout)
    b_fused = jnp.tile(bias, W)[src].reshape(1, W * Cout)
    return w_fused, b_fused


@jax.jit
def final_conv_layer(x_nchw, w_fused, b_fused):
    """FinalConvLayer forward: same-pad Conv2d(k=5, bias) + PixelShuffle(r). NCHW in / NCHW out."""
    r = UPSCALE
    N, Cin, H, W = x_nchw.shape
    KHKpad, WCout = w_fused.shape
    Kpad = KHKpad // KSIZE
    Cout = WCout // W
    C2 = Cout // (r * r)
    Hp = H + KSIZE - 1

    # Boundary layout glue only (PyTorch NCHW interface): NCHW -> NHWC, channels into lanes.
    # No jnp.pad here — padding is done inside the kernel in VMEM.
    x_flat = jnp.transpose(x_nchw, (0, 2, 3, 1)).reshape(N, H, W * Cin)

    itemsize = jnp.dtype(x_nchw.dtype).itemsize
    flops = 2 * N * H * W * KSIZE * KSIZE * Cin * Cout
    bytes_accessed = (x_flat.size + w_fused.size + b_fused.size + N * H * WCout) * itemsize

    out = pl.pallas_call(
        functools.partial(_fused_conv_shuffle_kernel, cin=Cin),
        out_shape=jax.ShapeDtypeStruct((N, H, WCout), x_nchw.dtype),
        grid_spec=pltpu.PrefetchScalarGridSpec(
            num_scalar_prefetch=0,
            grid=(N,),  # "parallel" batch axis -> both v7x TensorCores busy for N=2
            in_specs=[
                pl.BlockSpec((1, H, W * Cin), lambda n: (n, 0, 0)),
                # Constant block index across the grid -> single-buffered (no 2nd VMEM copy).
                pl.BlockSpec((KHKpad, WCout), lambda n: (0, 0),
                             pipeline_mode=pl.Buffered(1)),
                pl.BlockSpec((1, WCout), lambda n: (0, 0),
                             pipeline_mode=pl.Buffered(1)),
            ],
            out_specs=pl.BlockSpec((1, H, WCout), lambda n: (n, 0, 0)),
            scratch_shapes=[pltpu.VMEM((Hp, Kpad), jnp.float32)],
        ),
        compiler_params=pltpu.CompilerParams(
            dimension_semantics=("parallel",)),
        cost_estimate=pl.CostEstimate(flops=flops, transcendentals=0,
                                      bytes_accessed=bytes_accessed),
    )(x_flat, w_fused, b_fused)

    # Columns already in shuffled order: pure reshapes to shuffled NHWC, then one boundary
    # transpose back to PyTorch NCHW.
    out_nhwc = out.reshape(N, H, r, W * r, C2).reshape(N, H * r, W * r, C2)
    return jnp.transpose(out_nhwc, (0, 3, 1, 2))
    # TODO(synk): at realistic SR sizes, tile H with a (KH-1)-row halo so each grid step is an
    # M≈128–256 row matmul (batch-independent parallel axis for v7x's 2 cores), tile W (Wt=16/32)
    # so the O(W^2) Toeplitz weight stays under v7x's 64 MiB VMEM, and cast weights/activations
    # to bf16 once the accuracy budget allows.


def pixel_shuffle(x_nchw, r):
    """torch.nn.PixelShuffle(r) reference: [N, C*r*r, H, W] -> [N, C, H*r, W*r]."""
    N, Crr, H, W = x_nchw.shape
    C = Crr // (r * r)
    x = x_nchw.reshape(N, C, r, r, H, W)
    x = jnp.transpose(x, (0, 1, 4, 2, 5, 3))
    return x.reshape(N, C, H * r, W * r)


if __name__ == "__main__":
    # input_channels=4, output_channels=8 (divisible by upsample_scale**2=4), kernel_size=5.
    N, Cin, H, W = 2, 4, 16, 16
    Cout = 8

    key = jax.random.PRNGKey(0)
    kx, kw, kb = jax.random.split(key, 3)
    x = jax.random.normal(kx, (N, Cin, H, W), dtype=jnp.float32)
    weight = 0.1 * jax.random.normal(kw, (Cout, Cin, KSIZE, KSIZE), dtype=jnp.float32)
    bias = 0.1 * jax.random.normal(kb, (Cout,), dtype=jnp.float32)

    # Parameter fusion runs ONCE per weight set (hoisted out of the hot path).
    w_fused, b_fused = jax.block_until_ready(prepare_fused_params(weight, bias, W))

    out = jax.block_until_ready(final_conv_layer(x, w_fused, b_fused))
    assert out.shape == (N, Cout // (UPSCALE ** 2), H * UPSCALE, W * UPSCALE)

    # Cross-check against lax conv + reference pixel shuffle.
    ref_conv = jax.lax.conv_general_dilated(
        x, weight, window_strides=(1, 1), padding=((PAD, PAD), (PAD, PAD)),
        dimension_numbers=("NCHW", "OIHW", "NCHW")) + bias.reshape(1, Cout, 1, 1)
    ref = pixel_shuffle(ref_conv, UPSCALE)
    assert jnp.allclose(out, ref, atol=1e-4, rtol=1e-4)

    print("KERNEL_OK")
</pallas_src>

<mosaic_0001>
module attributes {stable_mosaic.version = 11 : i64} {
  func.func @_fused_conv_shuffle_kernel(%arg0: i32, %arg1: memref<1x16x64xf32, #tpu.memory_space<vmem>>, %arg2: memref<640x128xf32, #tpu.memory_space<vmem>>, %arg3: memref<1x128xf32, #tpu.memory_space<vmem>>, %arg4: memref<1x16x128xf32, #tpu.memory_space<vmem>>, %arg5: memref<20x128xf32, #tpu.memory_space<vmem>>) attributes {dimension_semantics = [#tpu.dimension_semantics<parallel>], iteration_bounds = array<i64: 2>, scalar_prefetch = 0 : i64, scratch_operands = 1 : i64, tpu.core_type = #tpu.core_type<tc>, window_params = [{transform_indices = @transform_0, window_bounds = array<i64: 1, 16, 64>}, {pipeline_mode = #tpu.pipeline_mode<synchronous>, transform_indices = @transform_1, window_bounds = array<i64: 640, 128>}, {pipeline_mode = #tpu.pipeline_mode<synchronous>, transform_indices = @transform_2, window_bounds = array<i64: 1, 128>}, {transform_indices = @transform_3, window_bounds = array<i64: 1, 16, 128>}]} {
    %cst = arith.constant 0.000000e+00 : f32
    %0 = vector.broadcast %cst : f32 to vector<20x128xf32>
    %c0 = arith.constant 0 : index
    %c0_0 = arith.constant 0 : index
    %1 = vector.load %arg5[%c0, %c0_0] : memref<20x128xf32, #tpu.memory_space<vmem>>, vector<20x128xf32>
    tpu.vector_store %arg5[%c0, %c0_0], %0 {strides = array<i32>} : memref<20x128xf32, #tpu.memory_space<vmem>>, vector<20x128xf32>,
    %c0_1 = arith.constant 0 : index
    %c0_2 = arith.constant 0 : index
    %c0_3 = arith.constant 0 : index
    %2 = vector.load %arg1[%c0_1, %c0_2, %c0_3] : memref<1x16x64xf32, #tpu.memory_space<vmem>>, vector<1x16x64xf32>
    %3 = vector.shape_cast %2 : vector<1x16x64xf32> to vector<16x64xf32>
    %c2 = arith.constant 2 : index
    %c8 = arith.constant 8 : index
    %4 = vector.load %arg5[%c2, %c8] : memref<20x128xf32, #tpu.memory_space<vmem>>, vector<16x64xf32>
    tpu.vector_store %arg5[%c2, %c8], %3 {strides = array<i32>} : memref<20x128xf32, #tpu.memory_space<vmem>>, vector<16x64xf32>,
    %c0_4 = arith.constant 0 : index
    %c0_5 = arith.constant 0 : index
    %5 = vector.load %arg5[%c0_4, %c0_5] : memref<20x128xf32, #tpu.memory_space<vmem>>, vector<16x128xf32>
    %c1 = arith.constant 1 : index
    %c0_6 = arith.constant 0 : index
    %6 = vector.load %arg5[%c1, %c0_6] : memref<20x128xf32, #tpu.memory_space<vmem>>, vector<16x128xf32>
    %c2_7 = arith.constant 2 : index
    %c0_8 = arith.constant 0 : index
    %7 = vector.load %arg5[%c2_7, %c0_8] : memref<20x128xf32, #tpu.memory_space<vmem>>, vector<16x128xf32>
    %c3 = arith.constant 3 : index
    %c0_9 = arith.constant 0 : index
    %8 = vector.load %arg5[%c3, %c0_9] : memref<20x128xf32, #tpu.memory_space<vmem>>, vector<16x128xf32>
    %c4 = arith.constant 4 : index
    %c0_10 = arith.constant 0 : index
    %9 = vector.load %arg5[%c4, %c0_10] : memref<20x128xf32, #tpu.memory_space<vmem>>, vector<16x128xf32>
    %10 = tpu.concatenate %5, %6, %7, %8, %9 in 1 : vector<16x128xf32>, vector<16x128xf32>, vector<16x128xf32>, vector<16x128xf32>, vector<16x128xf32> -> vector<16x640xf32>
    %c0_11 = arith.constant 0 : index
    %c0_12 = arith.constant 0 : index
    %11 = vector.load %arg2[%c0_11, %c0_12] : memref<640x128xf32, #tpu.memory_space<vmem>>, vector<640x128xf32>
    %cst_13 = arith.constant dense<0.000000e+00> : vector<16x128xf32>
    %12 = tpu.matmul %10, %11, %cst_13 {dimension_numbers = #tpu.dot_dimension_numbers<[1], [0], [0], [1], [0, 0, 1, 1], [], []>} : vector<16x640xf32>, vector<640x128xf32>, vector<16x128xf32> -> vector<16x128xf32>
    %c0_14 = arith.constant 0 : index
    %c0_15 = arith.constant 0 : index
    %13 = vector.load %arg3[%c0_14, %c0_15] : memref<1x128xf32, #tpu.memory_space<vmem>>, vector<1x128xf32>
    %14 = vector.broadcast %13 : vector<1x128xf32> to vector<16x128xf32>
    %15 = arith.addf %12, %14 : vector<16x128xf32>
    %c0_16 = arith.constant 0 : index
    %c0_17 = arith.constant 0 : index
    %c0_18 = arith.constant 0 : index
    %16 = vector.load %arg4[%c0_16, %c0_17, %c0_18] : memref<1x16x128xf32, #tpu.memory_space<vmem>>, vector<1x16x128xf32>
    %17 = vector.shape_cast %16 : vector<1x16x128xf32> to vector<16x128xf32>
    %18 = vector.shape_cast %15 : vector<16x128xf32> to vector<1x16x128xf32>
    tpu.vector_store %arg4[%c0_16, %c0_17, %c0_18], %18 {strides = array<i32>} : memref<1x16x128xf32, #tpu.memory_space<vmem>>, vector<1x16x128xf32>,
    return
  }
  func.func @transform_0(%arg0: i32) -> (i32, i32, i32) {
    %c0_i32 = arith.constant 0 : i32
    %c0_i32_0 = arith.constant 0 : i32
    %c0_i32_1 = arith.constant 0 : i32
    return %arg0, %c0_i32, %c0_i32_0 : i32, i32, i32
  }
  func.func @transform_1(%arg0: i32) -> (i32, i32) {
    %c0_i32 = arith.constant 0 : i32
    %c0_i32_0 = arith.constant 0 : i32
    %c0_i32_1 = arith.constant 0 : i32
    return %c0_i32, %c0_i32_0 : i32, i32
  }
  func.func @transform_2(%arg0: i32) -> (i32, i32) {
    %c0_i32 = arith.constant 0 : i32
    %c0_i32_0 = arith.constant 0 : i32
    %c0_i32_1 = arith.constant 0 : i32
    return %c0_i32, %c0_i32_0 : i32, i32
  }
  func.func @transform_3(%arg0: i32) -> (i32, i32, i32) {
    %c0_i32 = arith.constant 0 : i32
    %c0_i32_0 = arith.constant 0 : i32
    %c0_i32_1 = arith.constant 0 : i32
    return %arg0, %c0_i32, %c0_i32_0 : i32, i32, i32
  }
}

</mosaic_0001>

<bundles_post_ra>
// kernel: final_conv_layer.1
= control target key start
LH: loop header
LB: loop body
LE: loop exit
PB: predicated region body
PF: predicated region fallthrough
CT: control target
= control target key end

     0   :  { %8 = vsyncpa [#allocation4], 0  ;;  %s824_s12 = smov 0   ;;  %s873_s0 = inlined_call_operand.vmem [shape: f32[2,16,64], index: 0, kind: input, shape index: {}]   ;;  %s874_s1 = inlined_call_operand.hbm [shape: f32[640,128], index: 1, kind: input, shape index: {}]   ;;  %s875_s2 = inlined_call_operand.vmem [shape: f32[1,128], index: 2, kind: input, shape index: {}]   ;;  %s876_s3 = inlined_call_operand.vmem [shape: f32[2,16,128], index: 3, kind: output, shape index: {}]  }
   0x1 LB: > { %s830_s13 = sadd.s32 4294967295, %s797_s12   ;;  %p595_p0 = scmp.ge.s32.totalorder %s797_s12, 1  ;;  %s797_s12 = sphi %s824_s12, %s14_s12  }
   0x2   : > { %p113_p1 = scmp.lt.s32.totalorder %s797_s12, 3  ;;  %s799_s14 = smov [#allocation3]  }
   0x3   : > { %s125_s15 = sshll.u32 %s799_s14, 4  ;;  %p746_p3 = scmp.eq.s32.totalorder %s830_s13, 0  ;;  %s126_s15 = int_to_ptr.vmem [resolvable:$true] %s125_s15 }
   0x4   : > { %p834_p2 = pnand %p595_p0, %p113_p1  ;;  %s772_s17 = scalar_lea.vmem %s126_s15, 10240 }
   0x5   : > { %p773_p7 = scmp.ne.s32.totalorder %s126_s15, %s772_s17  ;;  %p780_p10 = scmp.lt.s32.totalorder %s126_s15, %s126_s15 }
   0x6   : > { %p742_p4 = pneg %p834_p2  ;;  %p781_p11 = scmp.lt.s32.totalorder %s772_s17, %s772_s17 }
   0x8   : > { %p743_p5 = pnand %p746_p3, %p742_p4  ;;  %p782_p12 = por %p781_p11, %p780_p10 }
   0xa   : > { %p763_p6 = pneg %p743_p5 }
   0xc   : > { %p775_p8 = pnand %p773_p7, %p763_p6 }
   0xe   : > { %p776_p9 = pneg %p775_p8 }
  0x10   : > { %p783_p13 = pnand %p782_p12, %p776_p9 }
  0x12   : > { %786 = shalt.err (!%p783_p13)
}
  0x13   : > { %s800_s18 = smov 128   ;;  %s801_s19 = smov 8  }
  0x14   : > { %745 = dma.hbm_to_vmem [thread:$0]  (!%p743_p5), %s874_s1, 10240, %s126_s15, [#allocation4], %s800_s18, %s800_s18, %s801_s19  }
  0x15   : > { %152 = sbr.rel (%p834_p2) target bundleno = 388 (0x184), region = 32 }
  0x1a   : > { %792 = dma.done.wait (%p746_p3), [#allocation4], 10240  }
  0x1b   : > { %794 = vsyncadd (%p746_p3), [#allocation4], 4294957056  ;;  %p176_p0 = scmp.lt.s32.totalorder %s830_s13, 1  ;;  %v802_v0 = vmov 0.0   ;;  %v243_v2 = vld [vmem:[#allocation3 + $0xf8] sm:$0xff]  ;;  %s803_s26 = smov 8  }
  0x1c   : > { %186 = vst [vmem:[#allocation2] sm:$0xff] %v802_v0  ;;  %187 = vst [vmem:[#allocation2 + $0x8] sm:$0xff] %v802_v0  ;;  %609 = vmatprep.subr.mxu0 %v243_v2  ;;  %v227_v3 = vld [vmem:[#allocation3 + $0x78] sm:$0xff]  ;;  %v242_v4 = vld [vmem:[#allocation3 + $0xf0] sm:$0xff]  ;;  %vm199_vm0 = vcmask 588864  }
  0x1d   : > { %188 = vst [vmem:[#allocation2 + $0x10] sm:$0xf] %v802_v0  ;;  %s879_s13 = smov (!%p176_p0, %s830_s13), 1  ;;  %v226_v5 = vld [vmem:[#allocation3 + $0x70] sm:$0xff]  ;;  %610 = vmatpush3.msra.mxu0 %v227_v3  ;;  %v241_v7 = vld [vmem:[#allocation3 + $0xe8] sm:$0xff]  ;;  %v275_v8 = vld [vmem:[#allocation3 + $0x1f8] sm:$0xff] }
  0x1e   : > { %s607_s22 = sshll.u32 %s879_s13, 4  ;;  %611 = vmatprep.subr.mxu0 %v242_v4  ;;  %v225_v9 = vld [vmem:[#allocation3 + $0x68] sm:$0xff]  ;;  %647 = vmatprep.subr.mxu1 %v275_v8  ;;  %v259_v10 = vld [vmem:[#allocation3 + $0x178] sm:$0xff]  ;;  %v240_v11 = vld [vmem:[#allocation3 + $0xe0] sm:$0xff] }
  0x1f   : > { %s180_s25 = scalar_lea.vmem %s873_s0, %s607_s22  ;;  %612 = vmatpush3.msra.mxu0 %v226_v5  ;;  %648 = vmatpush3.msra.mxu1 %v259_v10  ;;  %v274_v12 = vld [vmem:[#allocation3 + $0x1f0] sm:$0xff]  ;;  %v224_v14 = vld [vmem:[#allocation3 + $0x60] sm:$0xff]  ;;  %v273_v15 = vld [vmem:[#allocation3 + $0x1e8] sm:$0xff]  ;;  %s185_s4 = scalar_lea.vmem %s876_s3, %s607_s22 }
  0x20   : > { %v189_v1 = vld [vmem:[%s180_s25] sm:$0xff]  ;;  %v190_v6 = vld [vmem:[%s180_s25 + $0x8] sm:$0xff]  ;;  %613 = vmatprep.subr.mxu0 %v241_v7  ;;  %649 = vmatprep.subr.mxu1 %v274_v12  ;;  %v239_v16 = vld [vmem:[#allocation3 + $0xd8] sm:$0xff] }
  0x21   : > { %193 = vrot.lane.b32.xlu0 %v189_v1, %s803_s26  ;;  %v258_v13 = vld [vmem:[#allocation3 + $0x170] sm:$0xff]  ;;  %614 = vmatpush3.msra.mxu0 %v225_v9  ;;  %v257_v17 = vld [vmem:[#allocation3 + $0x168] sm:$0xff]  ;;  %v223_v18 = vld [vmem:[#allocation3 + $0x58] sm:$0xff] }
  0x22   : > { %615 = vmatprep.subr.mxu0 %v240_v11  ;;  %650 = vmatpush3.msra.mxu1 %v258_v13  ;;  %v272_v19 = vld [vmem:[#allocation3 + $0x1e0] sm:$0xff]  ;;  %v238_v20 = vld [vmem:[#allocation3 + $0xd0] sm:$0xff]  ;;  %v271_v23 = vld [vmem:[#allocation3 + $0x1d8] sm:$0xff] }
  0x23   : > { %616 = vmatpush3.msra.mxu0 %v224_v14  ;;  %651 = vmatprep.subr.mxu1 %v273_v15  ;;  %v256_v21 = vld [vmem:[#allocation3 + $0x160] sm:$0xff]  ;;  %v222_v22 = vld [vmem:[#allocation3 + $0x50] sm:$0xff]  ;;  %v237_v24 = vld [vmem:[#allocation3 + $0xc8] sm:$0xff] }
  0x24   : > { %617 = vmatprep.subr.mxu0 %v239_v16  ;;  %652 = vmatpush3.msra.mxu1 %v257_v17  ;;  %v255_v25 = vld [vmem:[#allocation3 + $0x158] sm:$0xff]  ;;  %v221_v26 = vld [vmem:[#allocation3 + $0x48] sm:$0xff]  ;;  %v270_v27 = vld [vmem:[#allocation3 + $0x1d0] sm:$0xff] }
  0x25   : > { %195 = vrot.lane.b32.xlu0 %v190_v6, %s803_s26  ;;  %618 = vmatpush3.msra.mxu0 %v223_v18  ;;  %v236_v28 = vld [vmem:[#allocation3 + $0xc0] sm:$0xff]  ;;  %v254_v29 = vld [vmem:[#allocation3 + $0x150] sm:$0xff]  ;;  %v269_v31 = vld [vmem:[#allocation3 + $0x1c8] sm:$0xff] }
  0x26   : > { %653 = vmatprep.subr.mxu1 %v272_v19  ;;  %619 = vmatprep.subr.mxu0 %v238_v20  ;;  %v220_v30 = vld [vmem:[#allocation3 + $0x40] sm:$0xff]  ;;  %v235_v32 = vld [vmem:[#allocation3 + $0xb8] sm:$0xff]  ;;  %v253_v33 = vld [vmem:[#allocation3 + $0x148] sm:$0xff] }
  0x27   : > { %654 = vmatpush3.msra.mxu1 %v256_v21  ;;  %620 = vmatpush3.msra.mxu0 %v222_v22  ;;  %v219_v34 = vld [vmem:[#allocation3 + $0x38] sm:$0xff]  ;;  %v268_v35 = vld [vmem:[#allocation3 + $0x1c0] sm:$0xff]  ;;  %v234_v36 = vld [vmem:[#allocation3 + $0xb0] sm:$0xff] }
  0x28   : > { %655 = vmatprep.subr.mxu1 %v271_v23  ;;  %621 = vmatprep.subr.mxu0 %v237_v24  ;;  %v252_v37 = vld [vmem:[#allocation3 + $0x140] sm:$0xff]  ;;  %v218_v38 = vld [vmem:[#allocation3 + $0x30] sm:$0xff]  ;;  %v267_v39 = vld [vmem:[#allocation3 + $0x1b8] sm:$0xff] }
  0x29   : > { %656 = vmatpush3.msra.mxu1 %v255_v25  ;;  %622 = vmatpush3.msra.mxu0 %v221_v26  ;;  %v233_v40 = vld [vmem:[#allocation3 + $0xa8] sm:$0xff]  ;;  %v251_v41 = vld [vmem:[#allocation3 + $0x138] sm:$0xff]  ;;  %v266_v43 = vld [vmem:[#allocation3 + $0x1b0] sm:$0xff] }
  0x2a   : > { %657 = vmatprep.subr.mxu1 %v270_v27  ;;  %623 = vmatprep.subr.mxu0 %v236_v28  ;;  %v217_v42 = vld [vmem:[#allocation3 + $0x28] sm:$0xff]  ;;  %v232_v44 = vld [vmem:[#allocation3 + $0xa0] sm:$0xff]  ;;  %v250_v45 = vld [vmem:[#allocation3 + $0x130] sm:$0xff] }
  0x2b   : > { %658 = vmatpush3.msra.mxu1 %v254_v29  ;;  %624 = vmatpush3.msra.mxu0 %v220_v30  ;;  %v216_v46 = vld [vmem:[#allocation3 + $0x20] sm:$0xff]  ;;  %v265_v47 = vld [vmem:[#allocation3 + $0x1a8] sm:$0xff]  ;;  %v231_v48 = vld [vmem:[#allocation3 + $0x98] sm:$0xff] }
  0x2c   : > { %659 = vmatprep.subr.mxu1 %v269_v31  ;;  %625 = vmatprep.subr.mxu0 %v235_v32  ;;  %v249_v49 = vld [vmem:[#allocation3 + $0x128] sm:$0xff]  ;;  %v215_v50 = vld [vmem:[#allocation3 + $0x18] sm:$0xff]  ;;  %v264_v51 = vld [vmem:[#allocation3 + $0x1a0] sm:$0xff] }
  0x2d   : > { %660 = vmatpush3.msra.mxu1 %v253_v33  ;;  %626 = vmatpush3.msra.mxu0 %v219_v34  ;;  %v230_v52 = vld [vmem:[#allocation3 + $0x90] sm:$0xff]  ;;  %v248_v53 = vld [vmem:[#allocation3 + $0x120] sm:$0xff]  ;;  %v263_v55 = vld [vmem:[#allocation3 + $0x198] sm:$0xff] }
  0x2e   : > { %661 = vmatprep.subr.mxu1 %v268_v35  ;;  %627 = vmatprep.subr.mxu0 %v234_v36  ;;  %v214_v54 = vld [vmem:[#allocation3 + $0x10] sm:$0xff]  ;;  %v229_v56 = vld [vmem:[#allocation3 + $0x88] sm:$0xff]  ;;  %v247_v57 = vld [vmem:[#allocation3 + $0x118] sm:$0xff] }
  0x2f   : > { %662 = vmatpush3.msra.mxu1 %v252_v37  ;;  %628 = vmatpush3.msra.mxu0 %v218_v38  ;;  %v213_v58 = vld [vmem:[#allocation3 + $0x8] sm:$0xff]  ;;  %v262_v59 = vld [vmem:[#allocation3 + $0x190] sm:$0xff]  ;;  %v228_v60 = vld [vmem:[#allocation3 + $0x80] sm:$0xff] }
  0x30   : > { %663 = vmatprep.subr.mxu1 %v267_v39  ;;  %629 = vmatprep.subr.mxu0 %v233_v40  ;;  %v246_v61 = vld [vmem:[#allocation3 + $0x110] sm:$0xff]  ;;  %v212_v62 = vld [vmem:[#allocation3] sm:$0xff]  ;;  %v261_v63 = vld [vmem:[#allocation3 + $0x188] sm:$0xff] }
  0x31   : > { %664 = vmatpush3.msra.mxu1 %v251_v41  ;;  %630 = vmatpush3.msra.mxu0 %v217_v42  ;;  %v291_v0 = vld [vmem:[#allocation3 + $0x278] sm:$0xff]  ;;  %v245_v1 = vld [vmem:[#allocation3 + $0x108] sm:$0xff]  ;;  %v260_v2 = vld [vmem:[#allocation3 + $0x180] sm:$0xff] }
  0x32   : > { %665 = vmatprep.subr.mxu1 %v266_v43  ;;  %631 = vmatprep.subr.mxu0 %v232_v44  ;;  %v244_v3 = vld [vmem:[#allocation3 + $0x100] sm:$0xff]  ;;  %v290_v8 = vld [vmem:[#allocation3 + $0x270] sm:$0xff]  ;;  %v289_v9 = vld [vmem:[#allocation3 + $0x268] sm:$0xff] }
  0x33   : > { %666 = vmatpush3.msra.mxu1 %v250_v45  ;;  %632 = vmatpush3.msra.mxu0 %v216_v46  ;;  %v288_v14 = vld [vmem:[#allocation3 + $0x260] sm:$0xff]  ;;  %v287_v17 = vld [vmem:[#allocation3 + $0x258] sm:$0xff]  ;;  %v286_v19 = vld [vmem:[#allocation3 + $0x250] sm:$0xff] }
  0x34   : > { %667 = vmatprep.subr.mxu1 %v265_v47  ;;  %633 = vmatprep.subr.mxu0 %v231_v48  ;;  %v285_v20 = vld [vmem:[#allocation3 + $0x248] sm:$0xff]  ;;  %v284_v21 = vld [vmem:[#allocation3 + $0x240] sm:$0xff]  ;;  %v283_v22 = vld [vmem:[#allocation3 + $0x238] sm:$0xff] }
  0x35   : > { %668 = vmatpush3.msra.mxu1 %v249_v49  ;;  %634 = vmatpush3.msra.mxu0 %v215_v50  ;;  %v282_v23 = vld [vmem:[#allocation3 + $0x230] sm:$0xff]  ;;  %v281_v24 = vld [vmem:[#allocation3 + $0x228] sm:$0xff]  ;;  %v280_v25 = vld [vmem:[#allocation3 + $0x220] sm:$0xff] }
  0x36   : > { %669 = vmatprep.subr.mxu1 %v264_v51  ;;  %635 = vmatprep.subr.mxu0 %v230_v52  ;;  %v279_v26 = vld [vmem:[#allocation3 + $0x218] sm:$0xff]  ;;  %v278_v27 = vld [vmem:[#allocation3 + $0x210] sm:$0xff]  ;;  %v277_v28 = vld [vmem:[#allocation3 + $0x208] sm:$0xff] }
  0x37   : > { %670 = vmatpush3.msra.mxu1 %v248_v53  ;;  %636 = vmatpush3.msra.mxu0 %v214_v54  ;;  %v276_v29 = vld [vmem:[#allocation3 + $0x200] sm:$0xff]  ;;  %v604_v42 = vld [vmem:[%s875_s2] ss:$0 sm:$0xff] }
  0x38   : > { %671 = vmatprep.subr.mxu1 %v263_v55  ;;  %637 = vmatprep.subr.mxu0 %v229_v56 }
  0x39   : > { %672 = vmatpush3.msra.mxu1 %v247_v57  ;;  %638 = vmatpush3.msra.mxu0 %v213_v58 }
  0x3a   : > { %673 = vmatprep.subr.mxu1 %v262_v59  ;;  %639 = vmatprep.subr.mxu0 %v228_v60 }
  0x3b   : > { %674 = vmatpush3.msra.mxu1 %v246_v61  ;;  %640 = vmatpush3.msra.mxu0 %v212_v62 }
  0x3c   : > { %675 = vmatprep.subr.mxu1 %v261_v63  ;;  %703 = vmatprep.subr.mxu0 %v291_v0 }
  0x3d   : > { %676 = vmatpush3.msra.mxu1 %v245_v1 }
  0x3e   : > { %677 = vmatprep.subr.mxu1 %v260_v2 }
  0x3f   : > { %678 = vmatpush3.msra.mxu1 %v244_v3 }
  0x93   : > { %v194_v4 = vpop.permute.xlu0 %193 }
  0x94   : > { %200 = vst.msk [vmem:[#allocation2 + $0x2] sm:$0xff] %vm199_vm0, %v194_v4 }
  0x97   : > { %v196_v5 = vpop.permute.xlu0 %195 }
  0x98   : > { %201 = vst.msk [vmem:[#allocation2 + $0xa] sm:$0xff] %vm199_vm0, %v196_v5 }
  0x9b   : > { %v204_v6 = vld [vmem:[#allocation2 + $0x1] sm:$0xff] }
  0x9c   : > { %v202_v7 = vld [vmem:[#allocation2] sm:$0xff]  ;;  %363 = vmatprep.mubr.f32.mxu0 %v204_v6 }
  0x9d   : > { %364 = vmatmul.mubr.f32.vlgmr.msra.gmra.mxu0 %v202_v7  ;;  %v206_v13 = vld [vmem:[#allocation2 + $0x2] sm:$0xff] }
  0x9e   : > { %704 = vmatpush3.msra.mxu0 %v291_v0 }
  0x9f   : > { %705 = vmatprep.subr.mxu0 %v290_v8  ;;  %v205_v10 = vld [vmem:[#allocation2 + $0x9] sm:$0xff] }
  0xa0   : > { %v208_v11 = vld [vmem:[#allocation2 + $0x3] sm:$0xff]  ;;  %706 = vmatpush3.msra.mxu0 %v290_v8  ;;  %368 = vmatprep.mubr.f32.mxu0 %v205_v10  ;;  %v209_v15 = vld [vmem:[#allocation2 + $0xb] sm:$0xff] }
  0xa1   : > { %v203_v12 = vld [vmem:[#allocation2 + $0x8] sm:$0xff]  ;;  %438 = vmatprep.mubr.f32.mxu1 %v208_v11  ;;  %707 = vmatprep.subr.mxu0 %v289_v9 }
  0xa2   : > { %369 = vmatmul.mubr.f32.gmra.mxu0 %v203_v12  ;;  %439 = vmatmul.mubr.f32.vlgmr.msra.gmra.mxu1 %v206_v13  ;;  %v210_v16 = vld [vmem:[#allocation2 + $0x4] sm:$0xff]  ;;  %v211_v30 = vld [vmem:[#allocation2 + $0xc] sm:$0xff] }
  0xa3   : > { %708 = vmatpush3.msra.mxu0 %v289_v9  ;;  %735 = vmatprep.mubr.f32.mxu0 %v210_v16  ;;  %v207_v18 = vld [vmem:[#allocation2 + $0xa] sm:$0xff] }
  0xa4   : > { %709 = vmatprep.subr.mxu0 %v288_v14  ;;  %443 = vmatprep.mubr.f32.mxu1 %v209_v15 }
  0xa5   : > { %710 = vmatpush3.msra.mxu0 %v288_v14 }
  0xa6   : > { %711 = vmatprep.subr.mxu0 %v287_v17  ;;  %444 = vmatmul.mubr.f32.gmra.mxu1 %v207_v18 }
  0xa7   : > { %712 = vmatpush3.msra.mxu0 %v287_v17 }
  0xa8   : > { %713 = vmatprep.subr.mxu0 %v286_v19 }
  0xa9   : > { %714 = vmatpush3.msra.mxu0 %v286_v19 }
  0xaa   : > { %715 = vmatprep.subr.mxu0 %v285_v20 }
  0xab   : > { %716 = vmatpush3.msra.mxu0 %v285_v20 }
  0xac   : > { %717 = vmatprep.subr.mxu0 %v284_v21 }
  0xad   : > { %718 = vmatpush3.msra.mxu0 %v284_v21 }
  0xae   : > { %719 = vmatprep.subr.mxu0 %v283_v22 }
  0xaf   : > { %720 = vmatpush3.msra.mxu0 %v283_v22 }
  0xb0   : > { %721 = vmatprep.subr.mxu0 %v282_v23 }
  0xb1   : > { %722 = vmatpush3.msra.mxu0 %v282_v23 }
  0xb2   : > { %723 = vmatprep.subr.mxu0 %v281_v24 }
  0xb3   : > { %724 = vmatpush3.msra.mxu0 %v281_v24 }
  0xb4   : > { %725 = vmatprep.subr.mxu0 %v280_v25 }
  0xb5   : > { %726 = vmatpush3.msra.mxu0 %v280_v25 }
  0xb6   : > { %727 = vmatprep.subr.mxu0 %v279_v26 }
  0xb7   : > { %728 = vmatpush3.msra.mxu0 %v279_v26 }
  0xb8   : > { %729 = vmatprep.subr.mxu0 %v278_v27 }
  0xb9   : > { %730 = vmatpush3.msra.mxu0 %v278_v27 }
  0xba   : > { %731 = vmatprep.subr.mxu0 %v277_v28 }
  0xbb   : > { %732 = vmatpush3.msra.mxu0 %v277_v28 }
  0xbc   : > { %733 = vmatprep.subr.mxu0 %v276_v29 }
  0xbd   : > { %734 = vmatpush3.msra.mxu0 %v276_v29 }
  0xbe   : > { %736 = vmatmul.mubr.f32.vlgmr.msra.gmra.mxu0 %v211_v30 }
 0x15d   : > { %v641_v31 = vpop.f32.mrf.mxu0 }
 0x15f   : > { %v642_v33 = vpop.f32.mrf.mxu0 }
 0x160   : > { %v643_v40 = vadd.f32 %v642_v33, %v641_v31 }
 0x162   : > { %v679_v32 = vpop.f32.mrf.mxu1  ;;  %v644_v35 = vpop.f32.mrf.mxu0  ;;  %v366_v45 = vadd.f32 %v643_v40, %v604_v42 }
 0x164   : > { %v680_v34 = vpop.f32.mrf.mxu1  ;;  %v645_v37 = vpop.f32.mrf.mxu0 }
 0x165   : > { %v646_v39 = vadd.f32 %v645_v37, %v644_v35  ;;  %v681_v44 = vadd.f32 %v680_v34, %v679_v32 }
 0x166   : > { %v682_v36 = vpop.f32.mrf.mxu1 }
 0x167   : > { %v371_v43 = vadd.f32 %v646_v39, %v604_v42  ;;  %v441_v49 = vadd.f32 %v681_v44, %v366_v45 }
 0x168   : > { %v683_v38 = vpop.f32.mrf.mxu1 }
 0x169   : > { %v684_v41 = vadd.f32 %v683_v38, %v682_v36 }
 0x16b   : > { %v446_v46 = vadd.f32 %v684_v41, %v371_v43 }
 0x17e   : > { %v737_v47 = vpop.f32.mrf.mxu0 }
 0x17f   : > { %v521_v48 = vadd.f32 %v737_v47, %v446_v46 }
 0x180   : > { %v515_v50 = vpop.f32.mrf.mxu0 }
 0x181   : > { %525 = vst [vmem:[%s185_s4 + $0x8] sm:$0xff] %v521_v48  ;;  %v516_v51 = vadd.f32 %v515_v50, %v441_v49 }
 0x183   : > { %524 = vst [vmem:[%s185_s4] sm:$0xff] %v516_v51 }
 0x184 PF: > { %s14_s12 = sadd.s32 1, %s797_s12  }
 0x185   : > { %p11_p1 = scmp.ge.s32.totalorder %s14_s12, 4  }
 0x187   :  { %13 = sbr.rel (!%p11_p1) target bundleno = 1 (0x1), region = 67 }
 0x18c   :  { %547 = vsyncpa [#allocation4], 1 }
 0x18d   :  { %549 = vsyncpa [#allocation4 + $0x1], 1 }

</bundles_post_ra>
